<compile_context>
chip_gen: v6e
topology: v6e:2x2x1
jax: 0.10.0
libtpu: 0.0.40
codegen_flags: <defaults>
</compile_context>

<pallas_src>
import functools

import jax
import jax.numpy as jnp
from jax import lax
from jax.experimental import pallas as pl
from jax.experimental.pallas import tpu as pltpu


def _cdiv(a, b):
    return (a + b - 1) // b


def _round_up(x, m):
    return _cdiv(x, m) * m


def _sublane(dtype):
    # Native sublane packing: 8 rows for 4-byte dtypes, 16 for bf16, 32 for int8.
    return 8 * max(1, 4 // jnp.dtype(dtype).itemsize)


def _flexmatch_rowstats_kernel(ls_ref, lw_ref, packed_ref, beta_ref, *,
                               inv_temp, threshold, n_valid, mask_rows):
    """Per-row stats + per-tile confident-class histogram for one (T, C) row tile."""
    tile_n, c = lw_ref.shape

    lw = lw_ref[...].astype(jnp.float32)                      # [T, C]
    if inv_temp != 1.0:   # static Python branch: skip the scale at temperature==1
        lw = lw * inv_temp
    ls = ls_ref[...].astype(jnp.float32)                      # [T, C]

    # --- weak-aug branch: max softmax prob (via its reciprocal) + argmax target ---
    mw = jnp.max(lw, axis=-1, keepdims=True)                  # [T, 1]
    ew = jnp.exp(lw - mw)                                      # [T, C]
    sum_ew = jnp.sum(ew, axis=-1, keepdims=True)               # [T, 1]; max_prob == 1/sum_ew

    cls_iota = lax.broadcasted_iota(jnp.int32, (tile_n, c), 1)
    is_max = lw == mw                                          # exact on pre-exp logits
    targets = jnp.min(jnp.where(is_max, cls_iota, c),
                      axis=-1, keepdims=True)                  # [T, 1] lowest-index tie-break
    one_hot = cls_iota == targets                              # [T, C]

    # max_prob > threshold  <=>  threshold * sum_ew < 1   (no divide needed)
    confident = sum_ew * threshold < 1.0                       # [T, 1]

    contrib_mask = jnp.logical_and(one_hot, confident)
    if mask_rows:  # boundary blocks: rows >= n_valid hold unspecified data -> mask them
        row = (lax.broadcasted_iota(jnp.int32, (tile_n, 1), 0)
               + pl.program_id(0) * tile_n)
        contrib_mask = jnp.logical_and(contrib_mask, row < n_valid)

    # Partial beta histogram on the otherwise-idle MXU: ones(1,T) @ contrib(T,C).
    # 0/1 in bf16 is exact and the counts (<= T) accumulate exactly in f32.
    contrib = jnp.where(contrib_mask, 1.0, 0.0).astype(jnp.bfloat16)   # [T, C]
    ones_row = jnp.ones((1, tile_n), jnp.bfloat16)
    beta_ref[0] = jnp.dot(ones_row, contrib,
                          preferred_element_type=jnp.float32)  # [1, C]

    # --- strong-aug branch: cross_entropy(logits_s, target) = logsumexp - ls[target] ---
    ms = jnp.max(ls, axis=-1, keepdims=True)
    lse = ms + jnp.log(jnp.sum(jnp.exp(ls - ms), axis=-1, keepdims=True))
    ls_tgt = jnp.sum(jnp.where(one_hot, ls, 0.0), axis=-1, keepdims=True)
    ce = lse - ls_tgt                                          # [T, 1]

    # --- pack the three per-row scalars onto 4 lanes: one output DMA per step ---
    lane = lax.broadcasted_iota(jnp.int32, (tile_n, 4), 1)
    packed = jnp.where(lane == 0, sum_ew, 0.0)
    packed = packed + jnp.where(lane == 1, ce, 0.0)
    packed = packed + jnp.where(lane == 2, targets.astype(jnp.float32), 0.0)
    packed_ref[...] = packed


def flexmatch_cross_entropy(logits_s, logits_w, *, num_classes,
                            temperature=1.0, threshold=0.95, reduction="mean"):
    n, c = logits_s.shape
    assert logits_w.shape == (n, c) and c == num_classes

    sub = max(_sublane(logits_s.dtype), _sublane(logits_w.dtype))
    itemsize = max(jnp.dtype(logits_s.dtype).itemsize, jnp.dtype(logits_w.dtype).itemsize)

    # Row tile: as large as the VMEM budget allows (amortize ~0.35us/grid-step),
    # capped at 2048 rows, forced to >=2 grid steps when the batch allows it
    # (keeps both v7x TensorCores busy), and a multiple of the dtype's sublane pack.
    lanes_c = _round_up(c, 128)                   # VMEM lane padding of a [T, c] tile
    bytes_per_row = 2 * 2 * lanes_c * itemsize + 10 * lanes_c * 4
    vmem_budget = 24 * 1024 * 1024
    cap = max(sub, min(2048, vmem_budget // bytes_per_row) // 128 * 128)
    tile_n = min(cap,
                 _round_up(_cdiv(n, 2), sub),     # >=2 tiles when n allows (v7x dual-TC)
                 _round_up(n, sub))               # never absurdly oversized for tiny n
    tile_n = max(sub, tile_n // sub * sub)

    num_tiles = _cdiv(n, tile_n)
    rows_alloc = num_tiles * tile_n               # only the tiny per-row output is padded

    kernel = functools.partial(
        _flexmatch_rowstats_kernel,
        inv_temp=float(1.0 / temperature),
        threshold=float(threshold),
        n_valid=n,
        mask_rows=(rows_alloc != n),
    )

    packed, beta_p = pl.pallas_call(
        kernel,
        out_shape=(
            jax.ShapeDtypeStruct((rows_alloc, 4), jnp.float32),    # [sum_ew, ce, target, 0]
            jax.ShapeDtypeStruct((num_tiles, 1, c), jnp.float32),  # per-tile beta histogram
        ),
        grid=(num_tiles,),
        in_specs=[
            pl.BlockSpec((tile_n, c), lambda i: (i, 0)),
            pl.BlockSpec((tile_n, c), lambda i: (i, 0)),
        ],
        out_specs=(
            pl.BlockSpec((tile_n, 4), lambda i: (i, 0)),
            pl.BlockSpec((1, 1, c), lambda i: (i, 0, 0)),
        ),
        compiler_params=pltpu.CompilerParams(
            # beta is per-tile (finalized in pass 2), so the row axis is truly parallel.
            dimension_semantics=("parallel",),
            vmem_limit_bytes=40 * 1024 * 1024,   # budgeted to ~24 MiB; safe on v7x's 64 MiB
        ),
        cost_estimate=pl.CostEstimate(
            flops=int(10 * n * c + 8 * n),
            transcendentals=int(2 * n * c + 2 * n),
            bytes_accessed=int(2 * n * c * itemsize + rows_alloc * 16 + num_tiles * c * 4),
        ),
    )(logits_s, logits_w)

    # --- tiny O(N + C) epilogue in plain JAX: beta norm, gather, masks, reduce ---
    stats = packed[:n]
    sum_ew = stats[:, 0]
    ce = stats[:, 1]
    targets = stats[:, 2].astype(jnp.int32)      # exact: class ids < 2^24 in f32

    beta = jnp.sum(beta_p[:, 0, :], axis=0)      # [C]
    # TODO(synk): torch.distributed.all_reduce(beta) would slot in here for multi-host.
    denom = jnp.maximum(jnp.max(beta), jnp.float32(n) - jnp.sum(beta))
    beta = beta / denom
    beta = beta / (2.0 - beta)

    # max_prob > threshold * beta[t]  <=>  threshold * beta[t] * sum_ew < 1
    masks = (threshold * beta[targets] * sum_ew < 1.0).astype(jnp.float32)
    loss = ce * masks
    # TODO(synk): PyTorch also stashes masks.mean() as self.μmask (side-effect only).
    if reduction == "mean":
        return jnp.mean(loss)
    if reduction == "sum":
        return jnp.sum(loss)
    return loss


def _reference(logits_s, logits_w, *, temperature, threshold, reduction):
    """Pure-JAX reference mirroring PyTorch FlexMatchCrossEntropy.forward (f32 math)."""
    logits_s = logits_s.astype(jnp.float32)
    logits_w = logits_w.astype(jnp.float32)
    n, c = logits_s.shape
    probs = jax.nn.softmax(logits_w / temperature, axis=-1)
    max_probs = probs.max(axis=-1)
    targets = probs.argmax(axis=-1)
    above = (max_probs > threshold).astype(jnp.float32)
    beta = jnp.zeros((c,), jnp.float32).at[targets].add(above)
    denom = jnp.maximum(beta.max(), n - beta.sum())
    beta = beta / denom
    beta = beta / (2.0 - beta)
    masks = (max_probs > threshold * beta[targets]).astype(jnp.float32)
    lse = jax.nn.logsumexp(logits_s, axis=-1)
    ce = lse - jnp.take_along_axis(logits_s, targets[:, None], axis=-1)[:, 0]
    loss = ce * masks
    if reduction == "mean":
        return loss.mean()
    if reduction == "sum":
        return loss.sum()
    return loss


if __name__ == "__main__":
    key = jax.random.PRNGKey(0)

    def _check(n, c, dtype, reduction, scale_w=4.0, tol=1e-5):
        ks, kw = jax.random.split(jax.random.fold_in(key, n * 1000 + c))
        ls = (jax.random.normal(ks, (n, c), jnp.float32) * 2.0).astype(dtype)
        # Scale weak-aug logits so some samples cross the 0.95 confidence threshold.
        lw = (jax.random.normal(kw, (n, c), jnp.float32) * scale_w).astype(dtype)
        out = flexmatch_cross_entropy(ls, lw, num_classes=c, temperature=1.0,
                                      threshold=0.95, reduction=reduction)
        out = jax.block_until_ready(out)
        ref = _reference(ls, lw, temperature=1.0, threshold=0.95, reduction=reduction)
        assert jnp.allclose(out, ref, atol=tol, rtol=tol), (n, c, dtype, reduction, out, ref)

    # f32, single tile, mean + none (really per-sample losses)
    _check(8, 32, jnp.float32, "mean")
    _check(8, 32, jnp.float32, "none")
    # bf16 inputs stream straight into the kernel (no wrapper upcast), two tiles
    _check(32, 32, jnp.bfloat16, "mean", tol=1e-4)
    # non-128 class count, two tiles, sum reduction
    _check(48, 10, jnp.float32, "sum")

    print("KERNEL_OK")
</pallas_src>

<mosaic_0001>
module attributes {stable_mosaic.version = 11 : i64} {
  func.func @_flexmatch_rowstats_kernel(%arg0: i32, %arg1: memref<8x32xf32, #tpu.memory_space<vmem>>, %arg2: memref<8x32xf32, #tpu.memory_space<vmem>>, %arg3: memref<8x4xf32, #tpu.memory_space<vmem>>, %arg4: memref<1x1x32xf32, #tpu.memory_space<vmem>>) attributes {dimension_semantics = [#tpu.dimension_semantics<parallel>], iteration_bounds = array<i64: 1>, scalar_prefetch = 0 : i64, scratch_operands = 0 : i64, tpu.core_type = #tpu.core_type<tc>, window_params = [{transform_indices = @transform_0, window_bounds = array<i64: 8, 32>}, {transform_indices = @transform_1, window_bounds = array<i64: 8, 32>}, {transform_indices = @transform_2, window_bounds = array<i64: 8, 4>}, {transform_indices = @transform_3, window_bounds = array<i64: 1, 1, 32>}]} {
    %c0 = arith.constant 0 : index
    %c0_0 = arith.constant 0 : index
    %0 = vector.load %arg2[%c0, %c0_0] : memref<8x32xf32, #tpu.memory_space<vmem>>, vector<8x32xf32>
    %c0_1 = arith.constant 0 : index
    %c0_2 = arith.constant 0 : index
    %1 = vector.load %arg1[%c0_1, %c0_2] : memref<8x32xf32, #tpu.memory_space<vmem>>, vector<8x32xf32>
    %cst = arith.constant dense<0xFF800000> : vector<8xf32>
    %2 = vector.multi_reduction <maximumf>, %0, %cst [1] : vector<8x32xf32> to vector<8xf32>
    %3 = vector.shape_cast %2 : vector<8xf32> to vector<8x1xf32>
    %4 = vector.broadcast %3 : vector<8x1xf32> to vector<8x32xf32>
    %5 = arith.subf %0, %4 : vector<8x32xf32>
    %6 = math.exp %5 : vector<8x32xf32>
    %cst_3 = arith.constant dense<0.000000e+00> : vector<8xf32>
    %7 = vector.multi_reduction <add>, %6, %cst_3 [1] : vector<8x32xf32> to vector<8xf32>
    %8 = vector.shape_cast %7 : vector<8xf32> to vector<8x1xf32>
    %9 = tpu.iota {dimensions = array<i32: 1>} : vector<8x32xi32>
    %10 = vector.broadcast %3 : vector<8x1xf32> to vector<8x32xf32>
    %11 = arith.cmpf oeq, %0, %10 : vector<8x32xf32>
    %c32_i32 = arith.constant 32 : i32
    %12 = vector.broadcast %c32_i32 : i32 to vector<8x32xi32>
    %13 = arith.select %11, %9, %12 : vector<8x32xi1>, vector<8x32xi32>
    %cst_4 = arith.constant dense<2147483647> : vector<8xi32>
    %14 = vector.multi_reduction <minsi>, %13, %cst_4 [1] : vector<8x32xi32> to vector<8xi32>
    %15 = vector.shape_cast %14 : vector<8xi32> to vector<8x1xi32>
    %16 = vector.broadcast %15 : vector<8x1xi32> to vector<8x32xi32>
    %17 = arith.cmpi eq, %9, %16 : vector<8x32xi32>
    %cst_5 = arith.constant 0.949999988 : f32
    %18 = vector.broadcast %cst_5 : f32 to vector<8x1xf32>
    %19 = arith.mulf %8, %18 : vector<8x1xf32>
    %cst_6 = arith.constant 1.000000e+00 : f32
    %20 = vector.broadcast %cst_6 : f32 to vector<8x1xf32>
    %21 = arith.cmpf olt, %19, %20 : vector<8x1xf32>
    %22 = vector.broadcast %21 : vector<8x1xi1> to vector<8x32xi1>
    %23 = arith.andi %17, %22 : vector<8x32xi1>
    %cst_7 = arith.constant 1.000000e+00 : f32
    %cst_8 = arith.constant 0.000000e+00 : f32
    %24 = vector.broadcast %cst_7 : f32 to vector<8x32xf32>
    %25 = vector.broadcast %cst_8 : f32 to vector<8x32xf32>
    %26 = arith.select %23, %24, %25 : vector<8x32xi1>, vector<8x32xf32>
    %27 = arith.truncf %26 : vector<8x32xf32> to vector<8x32xbf16>
    %cst_9 = arith.constant 1.000000e+00 : bf16
    %28 = vector.broadcast %cst_9 : bf16 to vector<1x8xbf16>
    %cst_10 = arith.constant dense<0.000000e+00> : vector<1x32xf32>
    %29 = tpu.matmul %28, %27, %cst_10 {dimension_numbers = #tpu.dot_dimension_numbers<[1], [0], [0], [1], [0, 0, 1, 1], [], []>} : vector<1x8xbf16>, vector<8x32xbf16>, vector<1x32xf32> -> vector<1x32xf32>
    %c0_11 = arith.constant 0 : index
    %c0_12 = arith.constant 0 : index
    %c0_13 = arith.constant 0 : index
    %30 = vector.load %arg4[%c0_11, %c0_12, %c0_13] : memref<1x1x32xf32, #tpu.memory_space<vmem>>, vector<1x1x32xf32>
    %31 = vector.shape_cast %30 : vector<1x1x32xf32> to vector<1x32xf32>
    %32 = vector.shape_cast %29 : vector<1x32xf32> to vector<1x1x32xf32>
    tpu.vector_store %arg4[%c0_11, %c0_12, %c0_13], %32 {strides = array<i32>} : memref<1x1x32xf32, #tpu.memory_space<vmem>>, vector<1x1x32xf32>,
    %cst_14 = arith.constant dense<0xFF800000> : vector<8xf32>
    %33 = vector.multi_reduction <maximumf>, %1, %cst_14 [1] : vector<8x32xf32> to vector<8xf32>
    %34 = vector.shape_cast %33 : vector<8xf32> to vector<8x1xf32>
    %35 = vector.broadcast %34 : vector<8x1xf32> to vector<8x32xf32>
    %36 = arith.subf %1, %35 : vector<8x32xf32>
    %37 = math.exp %36 : vector<8x32xf32>
    %cst_15 = arith.constant dense<0.000000e+00> : vector<8xf32>
    %38 = vector.multi_reduction <add>, %37, %cst_15 [1] : vector<8x32xf32> to vector<8xf32>
    %39 = vector.shape_cast %38 : vector<8xf32> to vector<8x1xf32>
    %40 = math.log %39 : vector<8x1xf32>
    %41 = arith.addf %34, %40 : vector<8x1xf32>
    %cst_16 = arith.constant 0.000000e+00 : f32
    %42 = vector.broadcast %cst_16 : f32 to vector<8x32xf32>
    %43 = arith.select %17, %1, %42 : vector<8x32xi1>, vector<8x32xf32>
    %cst_17 = arith.constant dense<0.000000e+00> : vector<8xf32>
    %44 = vector.multi_reduction <add>, %43, %cst_17 [1] : vector<8x32xf32> to vector<8xf32>
    %45 = vector.shape_cast %44 : vector<8xf32> to vector<8x1xf32>
    %46 = arith.subf %41, %45 : vector<8x1xf32>
    %47 = tpu.iota {dimensions = array<i32: 1>} : vector<8x4xi32>
    %c0_i32 = arith.constant 0 : i32
    %48 = vector.broadcast %c0_i32 : i32 to vector<8x4xi32>
    %49 = arith.cmpi eq, %47, %48 : vector<8x4xi32>
    %cst_18 = arith.constant 0.000000e+00 : f32
    %50 = vector.shape_cast %8 : vector<8x1xf32> to vector<8x1xf32>
    %51 = vector.broadcast %50 : vector<8x1xf32> to vector<8x4xf32>
    %52 = vector.broadcast %cst_18 : f32 to vector<8x4xf32>
    %53 = arith.select %49, %51, %52 : vector<8x4xi1>, vector<8x4xf32>
    %c1_i32 = arith.constant 1 : i32
    %54 = vector.broadcast %c1_i32 : i32 to vector<8x4xi32>
    %55 = arith.cmpi eq, %47, %54 : vector<8x4xi32>
    %cst_19 = arith.constant 0.000000e+00 : f32
    %56 = vector.shape_cast %46 : vector<8x1xf32> to vector<8x1xf32>
    %57 = vector.broadcast %56 : vector<8x1xf32> to vector<8x4xf32>
    %58 = vector.broadcast %cst_19 : f32 to vector<8x4xf32>
    %59 = arith.select %55, %57, %58 : vector<8x4xi1>, vector<8x4xf32>
    %60 = arith.addf %53, %59 : vector<8x4xf32>
    %c2_i32 = arith.constant 2 : i32
    %61 = vector.broadcast %c2_i32 : i32 to vector<8x4xi32>
    %62 = arith.cmpi eq, %47, %61 : vector<8x4xi32>
    %63 = arith.sitofp %15 : vector<8x1xi32> to vector<8x1xf32>
    %cst_20 = arith.constant 0.000000e+00 : f32
    %64 = vector.shape_cast %63 : vector<8x1xf32> to vector<8x1xf32>
    %65 = vector.broadcast %64 : vector<8x1xf32> to vector<8x4xf32>
    %66 = vector.broadcast %cst_20 : f32 to vector<8x4xf32>
    %67 = arith.select %62, %65, %66 : vector<8x4xi1>, vector<8x4xf32>
    %68 = arith.addf %60, %67 : vector<8x4xf32>
    %c0_21 = arith.constant 0 : index
    %c0_22 = arith.constant 0 : index
    %69 = vector.load %arg3[%c0_21, %c0_22] : memref<8x4xf32, #tpu.memory_space<vmem>>, vector<8x4xf32>
    tpu.vector_store %arg3[%c0_21, %c0_22], %68 {strides = array<i32>} : memref<8x4xf32, #tpu.memory_space<vmem>>, vector<8x4xf32>,
    return
  }
  func.func @transform_0(%arg0: i32) -> (i32, i32) {
    %c0_i32 = arith.constant 0 : i32
    %c0_i32_0 = arith.constant 0 : i32
    return %arg0, %c0_i32 : i32, i32
  }
  func.func @transform_1(%arg0: i32) -> (i32, i32) {
    %c0_i32 = arith.constant 0 : i32
    %c0_i32_0 = arith.constant 0 : i32
    return %arg0, %c0_i32 : i32, i32
  }
  func.func @transform_2(%arg0: i32) -> (i32, i32) {
    %c0_i32 = arith.constant 0 : i32
    %c0_i32_0 = arith.constant 0 : i32
    return %arg0, %c0_i32 : i32, i32
  }
  func.func @transform_3(%arg0: i32) -> (i32, i32, i32) {
    %c0_i32 = arith.constant 0 : i32
    %c0_i32_0 = arith.constant 0 : i32
    %c0_i32_1 = arith.constant 0 : i32
    return %arg0, %c0_i32, %c0_i32_0 : i32, i32, i32
  }
}

</mosaic_0001>

<bundles_post_ra>
// kernel: tpu_custom_call.1
= control target key start
LH: loop header
LB: loop body
LE: loop exit
PB: predicated region body
PF: predicated region fallthrough
CT: control target
= control target key end

     0   :  { %9 = vsyncpa [#allocation3], 0  ;;  %s315_s0 = inlined_call_operand.hbm [shape: f32[8,32], index: 0, kind: input, shape index: {}]   ;;  %s316_s1 = inlined_call_operand.hbm [shape: f32[8,32], index: 1, kind: input, shape index: {}]   ;;  %s317_s2 = inlined_call_operand.vmem [shape: f32[8,4], index: 2, kind: output, shape index: {0}]   ;;  %s318_s3 = inlined_call_operand.hbm [shape: f32[1,1,32], index: 3, kind: output, shape index: {1}]  }
   0x1   :  { %10 = vsyncpa [#allocation6], 0 }
   0x2   :  { %11 = vsyncpa [#allocation4], 0  ;;  %s264_s12 = smov [#allocation2]   ;;  %s265_s14 = smov [#allocation5]  }
   0x3   :  { %s18_s13 = sshll.u32 %s264_s12, 4  ;;  %s28_s15 = sshll.u32 %s265_s14, 4  ;;  %s19_s13 = int_to_ptr.vmem [resolvable:$true] %s18_s13  ;;  %s29_s15 = int_to_ptr.vmem [resolvable:$true] %s28_s15 }
   0x4   :  { %s206_s16 = scalar_lea.vmem %s19_s13, 128  ;;  %p211_p1 = scmp.lt.s32.totalorder %s19_s13, %s19_s13 }
   0x5   :  { %p207_p0 = scmp.ne.s32.totalorder %s19_s13, %s206_s16  ;;  %p212_p2 = scmp.lt.s32.totalorder %s206_s16, %s206_s16 }
   0x7   :  { %p213_p3 = por %p212_p2, %p211_p1 }
   0x9   :  { %p214_p4 = pnand %p213_p3, %p207_p0 }
   0xb   :  { %217 = shalt.err (!%p214_p4)
}
   0xc   :  { %21 = dma.hbm_to_vmem [thread:$0]  %s315_s0, 128, %s19_s13, [#allocation3]  }
   0xd   :  { %s226_s19 = scalar_lea.vmem %s29_s15, 128  ;;  %p231_p6 = scmp.lt.s32.totalorder %s29_s15, %s29_s15 }
   0xe   :  { %p227_p5 = scmp.ne.s32.totalorder %s29_s15, %s226_s19  ;;  %p232_p7 = scmp.lt.s32.totalorder %s226_s19, %s226_s19 }
  0x10   :  { %p233_p8 = por %p232_p7, %p231_p6 }
  0x12   :  { %p234_p9 = pnand %p233_p8, %p227_p5 }
  0x14   :  { %237 = shalt.err (!%p234_p9)
}
  0x15   :  { %31 = dma.hbm_to_vmem [thread:$0]  %s316_s1, 128, %s29_s15, [#allocation6]  }
  0x16   :  { %258 = dma.done.wait [#allocation3], 128  }
  0x17   :  { %259 = vsyncadd [#allocation3], 4294967168 }
  0x18   :  { %260 = dma.done.wait [#allocation6], 128  }
  0x19   :  { %261 = vsyncadd [#allocation6], 4294967168  ;;  %vm42_vm0 = vcmask 261120   ;;  %v40_v0 = vld [vmem:[#allocation5] sm:$0xff]  ;;  %v52_v2 = vlaneseq  ;;  %v41_v9 = vld [vmem:[#allocation2] sm:$0xff]  ;;  %v266_v22 = vmov 0.0  }
  0x1a   :  { %v43_v1 = vsel %vm42_vm0, %v40_v0, -inf  ;;  %v129_v10 = vsel %vm42_vm0, %v41_v9, -inf  ;;  %180 = vmatprep.subr.bf16.mxu0 %v266_v22  ;;  %vm267_vm3 = vmmov 0   ;;  %vm83_vm7 = vcmask 1043456   ;;  %s269_s22 = smov [#allocation7]  }
  0x1b   :  { %44 = vmax.xlane.f32.xlu0 %v43_v1  ;;  %v297_v3 = vand.u32 127, %v52_v2  ;;  %182 = vmatprep.mubr.msk.bf16.mxu0 %vm267_vm3, %v266_v22  ;;  %vm79_vm8 = vcmask 64512   ;;  %v268_v37 = vmov 1065369472   ;;  %vm155_vm12 = vcmask 31744   ;;  %s165_s23 = sshll.u32 %s269_s22, 4  ;;  %s166_s23 = int_to_ptr.vmem [resolvable:$true] %s165_s23 }
  0x1c   :  { %vm127_vm13 = vcmask 253952   ;;  %s238_s24 = scalar_lea.vmem %s166_s23, 16  ;;  %s242_s25 = scalar_lea.vmem %s166_s23, 32 }
  0x1d   :  { %vm146_vm9 = vcmp.eq.s32.totalorder %v297_v3, 0  ;;  %vm148_vm10 = vcmp.eq.s32.totalorder %v297_v3, 1  ;;  %vm151_vm11 = vcmp.eq.s32.totalorder %v297_v3, 2  ;;  %p239_p10 = scmp.ne.s32.totalorder %s166_s23, %s238_s24  ;;  %p243_p11 = scmp.lt.s32.totalorder %s166_s23, %s166_s23 }
  0x1e   :  { %p244_p12 = scmp.lt.s32.totalorder %s242_s25, %s238_s24 }
  0x20   :  { %p245_p13 = por %p244_p12, %p243_p11 }
  0x22   :  { %p246_p0 = pnand %p245_p13, %p239_p10 }
  0xa4   :  { %v45_v4 = vpop.xlane.xlu0 %44 }
  0xa5   :  { %vm54_vm1 = vcmp.eq.f32.partialorder %v40_v0, %v45_v4  ;;  %v46_v11 = vsub.f32 %v40_v0, %v45_v4 }
  0xa6   :  { %v55_v5 = vsel %vm54_vm1, %v297_v3, 32 }
  0xa7   :  { %v56_v6 = vsel %vm42_vm0, %v55_v5, 2147483647  ;;  %v47_v12 = vmul.f32 1.442695, %v46_v11 }
  0xa8   :  { %v58_v7 = vshra.s32 %v56_v6, 16  ;;  %v57_v13 = vand.u32 65535, %v56_v6 }
  0xa9   :  { %192 = vpow2.f32 %v47_v12 }
  0xaa   :  { %v60_v8 = vcvt.s32.f32 %v58_v7  ;;  %v59_v15 = vcvt.s32.f32 %v57_v13 }
  0xac   :  { %61 = vmin.xlane.f32.xlu0 %v60_v8 }
  0xb0   :  { %130 = vmax.xlane.f32.xlu0 %v129_v10 }
  0xb6   :  { %v193_v17 = vpop.eup %192 }
  0xb7   :  { %v49_v20 = vsel %vm42_vm0, %v193_v17, 0.0 }
 0x135   :  { %v62_v14 = vpop.xlane.xlu0 %61 }
 0x136   :  { %vm63_vm2 = vcmp.eq.f32.partialorder %v60_v8, %v62_v14  ;;  %v68_v25 = vcvt.f32.s32 %v62_v14 }
 0x137   :  { %v64_v16 = vsel %vm63_vm2, %v59_v15, inf }
 0x138   :  { %65 = vmin.xlane.f32.xlu1 %v64_v16  ;;  %v69_v27 = vshll.u32 %v68_v25, 16 }
 0x139   :  { %v131_v18 = vpop.xlane.xlu0 %130 }
 0x13a   :  { %v132_v19 = vsub.f32 %v41_v9, %v131_v18 }
 0x13c   :  { %v133_v21 = vmul.f32 1.442695, %v132_v19  ;;  %50 = vadd.xlane.f32.xlu1 %v49_v20 }
 0x13e   :  { %194 = vpow2.f32 %v133_v21 }
 0x14b   :  { %v195_v23 = vpop.eup %194 }
 0x14c   :  { %v135_v24 = vsel %vm42_vm0, %v195_v23, 0.0 }
 0x14d   :  { %136 = vadd.xlane.f32.xlu1 %v135_v24 }
 0x1c1   :  { %v66_v26 = vpop.xlane.xlu1 %65 }
 0x1c2   :  { %v67_v28 = vcvt.f32.s32 %v66_v26 }
 0x1c4   :  { %v70_v29 = vadd.s32 %v69_v27, %v67_v28 }
 0x1c5   :  { %v51_v30 = vpop.xlane.xlu1 %50 }
 0x1c6   :  { %v72_v31 = vmul.f32 0.95, %v51_v30  ;;  %vm71_vm4 = vcmp.eq.s32.totalorder %v297_v3, %v70_v29  ;;  %v152_v43 = vcvt.s32.f32 %v70_v29  ;;  %v147_v45 = vsel %vm146_vm9, %v51_v30, 0.0 }
 0x1c7   :  { %v141_v32 = vsel %vm71_vm4, %v41_v9, 0.0 }
 0x1c8   :  { %vm73_vm5 = vcmp.lt.f32.partialorder %v72_v31, 1.0  ;;  %v142_v33 = vsel %vm42_vm0, %v141_v32, 0.0  ;;  %v153_v48 = vsel %vm151_vm11, %v152_v43, 0.0 }
 0x1c9   :  { %143 = vadd.xlane.f32.xlu0 %v142_v33  ;;  %vm76_vm6 = vmand %vm71_vm4, %vm73_vm5 }
 0x1ca   :  { %v77_v34 = vsel %vm76_vm6, 1.0, %v266_v22 }
 0x1cb   :  { %v78_v35 = vpack.c.bf16 %v77_v34, %v77_v34 }
 0x1cd   :  { %v85_v36 = vsel %vm83_vm7, %v78_v35, 0 }
 0x1ce   :  { %181 = vmatpush3.bf16.msra.mxu0 %v85_v36 }
 0x1d1   :  { %183 = vmatmul.mubr.msk.bf16.vlgmr.msra.gmra.mxu0 %vm79_vm8, %v268_v37 }
 0x1d6   :  { %v137_v38 = vpop.xlane.xlu1 %136 }
 0x1d7   :  { %196 = vlog2.f32 %v137_v38 }
 0x1e4   :  { %v197_v39 = vpop.eup %196 }
 0x1e5   :  { %v139_v40 = vmul.f32 0.6931472, %v197_v39 }
 0x1e7   :  { %v140_v41 = vadd.f32 %v139_v40, %v131_v18 }
 0x252   :  { %v144_v42 = vpop.xlane.xlu0 %143 }
 0x253   :  { %v145_v44 = vsub.f32 %v140_v41, %v144_v42 }
 0x255   :  { %v149_v46 = vsel %vm148_vm10, %v145_v44, 0.0 }
 0x256   :  { %v150_v47 = vadd.f32 %v149_v46, %v147_v45 }
 0x258   :  { %v154_v49 = vadd.f32 %v153_v48, %v150_v47 }
 0x25a   :  { %156 = vst.msk [vmem:[%s317_s2] sm:$0xff] %vm155_vm12, %v154_v49 }
 0x291   :  { %v121_v50 = vpop.f32.mrf.mxu0 }
 0x292   :  { %128 = vst.msk [vmem:[#allocation7] sm:$0x1] %vm127_vm13, %v121_v50 }
 0x293   :  { %v184_v51 = vpop.f32.mrf.mxu0 }
 0x294   :  { %249 = shalt.err (!%p246_p0)
}
 0x295   :  { %168 = dma.vmem_to_hbm [thread:$0]  %s166_s23, 16, %s318_s3, [#allocation4]   ;;  %v124_v52 = vpop.f32.mrf.mxu0 }
 0x297   :  { %v185_v53 = vpop.f32.mrf.mxu0 }
 0x298   :  { %262 = dma.done.wait [#allocation4], 16  }
 0x299   :  { %263 = vsyncadd [#allocation4], 4294967280 }
 0x29a   :  { %174 = vsyncpa [#allocation3], 1 }
 0x29b   :  { %175 = vsyncpa [#allocation6], 1 }
 0x29c   :  { %176 = vsyncpa [#allocation4], 1 }

</bundles_post_ra>
